<compile_context>
chip_gen: v7x
topology: tpu7x:2x2x1
jax: 0.10.0
libtpu: 0.0.40
codegen_flags: <defaults>
</compile_context>

<pallas_src>
import functools

import jax
import jax.numpy as jnp
from jax.experimental import pallas as pl
from jax.experimental.pallas import tpu as pltpu


def _round_up(x, m):
    return (x + m - 1) // m * m


def _supcon_kernel(int_ref, sw_ref, fq_ref, fk_ref, lq_ref, lk_ref, out_ref, *,
                   temperature, base_temperature):
    TQ, D = fq_ref.shape
    Bp = fk_ref.shape[0]
    qi = pl.program_id(0)

    fac_label = int_ref[0]        # SMEM scalars
    n_valid = int_ref[1]
    scale_weight = sw_ref[0]

    # (TQ, Bp) similarities: bf16 x bf16 -> f32 on the MXU; 1/temperature folded
    # into the query operand ((TQ, D) multiply instead of a (TQ, Bp) divide).
    inv_t = 1.0 / temperature
    fq = (fq_ref[...].astype(jnp.float32) * inv_t).astype(jnp.bfloat16)
    sim = jax.lax.dot_general(
        fq, fk_ref[...], (((1,), (1,)), ((), ())),
        preferred_element_type=jnp.float32)                          # (TQ, Bp)

    lq = lq_ref[...]                                                 # (TQ, 1) int32
    lk = lk_ref[...]                                                 # (1, Bp) int32

    row_id = qi * TQ + jax.lax.broadcasted_iota(jnp.int32, (TQ, Bp), 0)
    col_id = jax.lax.broadcasted_iota(jnp.int32, (TQ, Bp), 1)
    col_valid = col_id < n_valid                       # drop padded key columns
    not_diag = row_id != col_id                        # exclude self-contrast
    row_valid = (qi * TQ
                 + jax.lax.broadcasted_iota(jnp.int32, (TQ, 1), 0)) < n_valid

    same = lq == lk                                                  # (TQ, Bp) bool
    pos = same & not_diag & col_valid                                # positives mask
    denom_mask = not_diag & col_valid                                # logits_mask

    # Row max over valid columns (diagonal included, as in the reference).
    neg_big = jnp.float32(-1e30)
    logits_max = jnp.max(jnp.where(col_valid, sim, neg_big), axis=1, keepdims=True)
    logits = sim - logits_max

    denom = jnp.sum(jnp.where(denom_mask, jnp.exp(logits), 0.0),
                    axis=1, keepdims=True)                           # (TQ, 1)
    cnt = jnp.sum(pos.astype(jnp.float32), axis=1, keepdims=True)    # (TQ, 1)
    pos_logit_sum = jnp.sum(jnp.where(pos, logits, 0.0),
                            axis=1, keepdims=True)                   # (TQ, 1)

    # sum_j mask_ij*log_prob_ij == sum_j mask_ij*logits_ij - cnt_i*log(denom_i)
    num = pos_logit_sum - cnt * jnp.log(denom)
    # rows whose label == fac_label get their positives scaled by scale_weight
    row_scale = 1.0 + (lq == fac_label).astype(jnp.float32) * (scale_weight - 1.0)
    inv_cnt = jnp.where(cnt == 0.0, 0.0, 1.0 / cnt)    # torch loop: skip rows w/o positives
    loss_row = -(temperature / base_temperature) * row_scale * num * inv_cnt
    out_ref[...] = jnp.where(row_valid, loss_row, 0.0)               # (TQ, 1)


def supcon_loss(features, labels, fac_label, scale_weight,
                temperature=0.07, base_temperature=0.07):
    """Pallas implementation of SupConLoss.forward(features, labels=..., fac_label=..., scale_weight=...)."""
    B, D = features.shape
    TQ = min(128, _round_up(B, 8))
    B_pad = _round_up(B, TQ)
    nb = B_pad // TQ

    feats = features.astype(jnp.bfloat16)
    labels = labels.astype(jnp.int32)
    if B_pad != B:
        feats = jnp.pad(feats, ((0, B_pad - B), (0, 0)))
        labels = jnp.pad(labels, (0, B_pad - B), constant_values=-1)

    lab_col = labels.reshape(B_pad, 1)
    lab_row = labels.reshape(1, B_pad)
    ints = jnp.array([fac_label, B], dtype=jnp.int32)      # [fac_label, n_valid]
    sw = jnp.array([scale_weight], dtype=jnp.float32)

    kernel = functools.partial(_supcon_kernel,
                               temperature=float(temperature),
                               base_temperature=float(base_temperature))
    per_row = pl.pallas_call(
        kernel,
        grid=(nb,),
        out_shape=jax.ShapeDtypeStruct((B_pad, 1), jnp.float32),
        in_specs=[
            pl.BlockSpec(memory_space=pltpu.MemorySpace.SMEM),   # [fac_label, n_valid]
            pl.BlockSpec(memory_space=pltpu.MemorySpace.SMEM),   # [scale_weight]
            pl.BlockSpec((TQ, D), lambda i: (i, 0)),             # query row block
            pl.BlockSpec((B_pad, D), lambda i: (0, 0)),          # resident key slab
            pl.BlockSpec((TQ, 1), lambda i: (i, 0)),             # labels (column form)
            pl.BlockSpec((1, B_pad), lambda i: (0, 0)),          # labels (row form)
        ],
        out_specs=pl.BlockSpec((TQ, 1), lambda i: (i, 0)),       # per-row losses
        compiler_params=pltpu.CompilerParams(
            dimension_semantics=("parallel",)),
    )(ints, sw, feats, feats, lab_col, lab_row)
    return jnp.sum(per_row) / B                                  # .mean() over batch


def supcon_loss_ref(features, labels, fac_label, scale_weight,
                    temperature=0.07, base_temperature=0.07):
    """Pure-JAX mirror of the PyTorch forward (labels branch)."""
    B = features.shape[0]
    labels = labels.reshape(-1, 1)
    mask = (labels == labels.T).astype(jnp.float32)
    is_fac = labels[:, 0] == fac_label
    mask_scale = jnp.where(is_fac[:, None], mask * scale_weight, mask)
    sim = (features @ features.T) / temperature
    logits = sim - jnp.max(sim, axis=1, keepdims=True)
    logits_mask = 1.0 - jnp.eye(B, dtype=jnp.float32)
    mask = mask * logits_mask
    mask_scale = mask_scale * logits_mask
    exp_logits = jnp.exp(logits) * logits_mask
    log_prob = logits - jnp.log(exp_logits.sum(1, keepdims=True))
    num = (mask_scale * log_prob).sum(1)
    cnt = mask.sum(1)
    inv = jnp.where(cnt == 0, 0.0, 1.0 / cnt)
    return (-(temperature / base_temperature) * num * inv).mean()


if __name__ == "__main__":
    key = jax.random.PRNGKey(0)
    k_feat, k_lab = jax.random.split(key)
    B, D = 8, 32                        # features: [bsz, hidden]
    feats = jax.random.normal(k_feat, (B, D), dtype=jnp.float32)
    # SupConLoss operates on L2-normalized embeddings (as in the Chameleon
    # client); un-normalized features at T=0.07 underflow exp() in f32 and the
    # PyTorch reference itself returns NaN.
    feats = feats / jnp.linalg.norm(feats, axis=1, keepdims=True)
    labels = jax.random.randint(k_lab, (B,), 0, 3, dtype=jnp.int32)
    fac_label = 1
    scale_weight = 2.0

    loss = supcon_loss(feats, labels, fac_label, scale_weight)
    loss = jax.block_until_ready(loss)

    ref = supcon_loss_ref(feats, labels, fac_label, scale_weight)
    assert jnp.isfinite(loss), loss
    assert jnp.allclose(loss, ref, rtol=5e-2, atol=5e-2), (loss, ref)
    print("KERNEL_OK")
</pallas_src>

<mosaic_0001>
module attributes {stable_mosaic.version = 11 : i64} {
  func.func @_supcon_kernel(%arg0: i32, %arg1: memref<2xi32, #tpu.memory_space<smem>>, %arg2: memref<1xf32, #tpu.memory_space<smem>>, %arg3: memref<8x32xbf16, #tpu.memory_space<vmem>>, %arg4: memref<8x32xbf16, #tpu.memory_space<vmem>>, %arg5: memref<8x1xi32, #tpu.memory_space<vmem>>, %arg6: memref<1x8xi32, #tpu.memory_space<vmem>>, %arg7: memref<8x1xf32, #tpu.memory_space<vmem>>) attributes {dimension_semantics = [#tpu.dimension_semantics<parallel>], iteration_bounds = array<i64: 1>, scalar_prefetch = 0 : i64, scratch_operands = 0 : i64, tpu.core_type = #tpu.core_type<tc>, window_params = [{transform_indices = @transform_0, window_bounds = array<i64: 2>}, {transform_indices = @transform_1, window_bounds = array<i64: 1>}, {transform_indices = @transform_2, window_bounds = array<i64: 8, 32>}, {pipeline_mode = #tpu.pipeline_mode<synchronous>, transform_indices = @transform_3, window_bounds = array<i64: 8, 32>}, {transform_indices = @transform_4, window_bounds = array<i64: 8, 1>}, {pipeline_mode = #tpu.pipeline_mode<synchronous>, transform_indices = @transform_5, window_bounds = array<i64: 1, 8>}, {transform_indices = @transform_6, window_bounds = array<i64: 8, 1>}]} {
    %c0 = arith.constant 0 : index
    %0 = memref.load %arg1[%c0] : memref<2xi32, #tpu.memory_space<smem>>
    %c1 = arith.constant 1 : index
    %1 = memref.load %arg1[%c1] : memref<2xi32, #tpu.memory_space<smem>>
    %c0_0 = arith.constant 0 : index
    %2 = memref.load %arg2[%c0_0] : memref<1xf32, #tpu.memory_space<smem>>
    %c0_1 = arith.constant 0 : index
    %c0_2 = arith.constant 0 : index
    %3 = vector.load %arg3[%c0_1, %c0_2] : memref<8x32xbf16, #tpu.memory_space<vmem>>, vector<8x32xbf16>
    %4 = arith.extf %3 : vector<8x32xbf16> to vector<8x32xf32>
    %cst = arith.constant 14.2857141 : f32
    %5 = vector.broadcast %cst : f32 to vector<8x32xf32>
    %6 = arith.mulf %4, %5 : vector<8x32xf32>
    %7 = arith.truncf %6 : vector<8x32xf32> to vector<8x32xbf16>
    %c0_3 = arith.constant 0 : index
    %c0_4 = arith.constant 0 : index
    %8 = vector.load %arg4[%c0_3, %c0_4] : memref<8x32xbf16, #tpu.memory_space<vmem>>, vector<8x32xbf16>
    %cst_5 = arith.constant dense<0.000000e+00> : vector<8x8xf32>
    %9 = tpu.matmul %7, %8, %cst_5 {dimension_numbers = #tpu.dot_dimension_numbers<[1], [1], [0], [0], [0, 0, 1, 0], [], []>} : vector<8x32xbf16>, vector<8x32xbf16>, vector<8x8xf32> -> vector<8x8xf32>
    %c0_6 = arith.constant 0 : index
    %c0_7 = arith.constant 0 : index
    %10 = vector.load %arg5[%c0_6, %c0_7] : memref<8x1xi32, #tpu.memory_space<vmem>>, vector<8x1xi32>
    %c0_8 = arith.constant 0 : index
    %c0_9 = arith.constant 0 : index
    %11 = vector.load %arg6[%c0_8, %c0_9] : memref<1x8xi32, #tpu.memory_space<vmem>>, vector<1x8xi32>
    %c8_i32 = arith.constant 8 : i32
    %12 = arith.muli %arg0, %c8_i32 : i32
    %13 = tpu.iota {dimensions = array<i32: 0>} : vector<8x8xi32>
    %14 = vector.broadcast %12 : i32 to vector<8x8xi32>
    %15 = arith.addi %14, %13 : vector<8x8xi32>
    %16 = tpu.iota {dimensions = array<i32: 1>} : vector<8x8xi32>
    %17 = vector.broadcast %1 : i32 to vector<8x8xi32>
    %18 = arith.cmpi slt, %16, %17 : vector<8x8xi32>
    %19 = arith.cmpi ne, %15, %16 : vector<8x8xi32>
    %c8_i32_10 = arith.constant 8 : i32
    %20 = arith.muli %arg0, %c8_i32_10 : i32
    %21 = tpu.iota {dimensions = array<i32: 0>} : vector<8x1xi32>
    %22 = vector.broadcast %20 : i32 to vector<8x1xi32>
    %23 = arith.addi %22, %21 : vector<8x1xi32>
    %24 = vector.broadcast %1 : i32 to vector<8x1xi32>
    %25 = arith.cmpi slt, %23, %24 : vector<8x1xi32>
    %26 = vector.broadcast %10 : vector<8x1xi32> to vector<8x8xi32>
    %27 = vector.broadcast %11 : vector<1x8xi32> to vector<8x8xi32>
    %28 = arith.cmpi eq, %26, %27 : vector<8x8xi32>
    %29 = arith.andi %28, %19 : vector<8x8xi1>
    %30 = arith.andi %29, %18 : vector<8x8xi1>
    %31 = arith.andi %19, %18 : vector<8x8xi1>
    %cst_11 = arith.constant -1.000000e+30 : f32
    %32 = vector.broadcast %cst_11 : f32 to vector<8x8xf32>
    %33 = arith.select %18, %9, %32 : vector<8x8xi1>, vector<8x8xf32>
    %cst_12 = arith.constant dense<0xFF800000> : vector<8xf32>
    %34 = vector.multi_reduction <maximumf>, %33, %cst_12 [1] : vector<8x8xf32> to vector<8xf32>
    %35 = vector.shape_cast %34 : vector<8xf32> to vector<8x1xf32>
    %36 = vector.broadcast %35 : vector<8x1xf32> to vector<8x8xf32>
    %37 = arith.subf %9, %36 : vector<8x8xf32>
    %38 = math.exp %37 : vector<8x8xf32>
    %cst_13 = arith.constant 0.000000e+00 : f32
    %39 = vector.broadcast %cst_13 : f32 to vector<8x8xf32>
    %40 = arith.select %31, %38, %39 : vector<8x8xi1>, vector<8x8xf32>
    %cst_14 = arith.constant dense<0.000000e+00> : vector<8xf32>
    %41 = vector.multi_reduction <add>, %40, %cst_14 [1] : vector<8x8xf32> to vector<8xf32>
    %42 = vector.shape_cast %41 : vector<8xf32> to vector<8x1xf32>
    %43 = arith.extui %30 : vector<8x8xi1> to vector<8x8xi32>
    %44 = arith.sitofp %43 : vector<8x8xi32> to vector<8x8xf32>
    %cst_15 = arith.constant dense<0.000000e+00> : vector<8xf32>
    %45 = vector.multi_reduction <add>, %44, %cst_15 [1] : vector<8x8xf32> to vector<8xf32>
    %46 = vector.shape_cast %45 : vector<8xf32> to vector<8x1xf32>
    %cst_16 = arith.constant 0.000000e+00 : f32
    %47 = vector.broadcast %cst_16 : f32 to vector<8x8xf32>
    %48 = arith.select %30, %37, %47 : vector<8x8xi1>, vector<8x8xf32>
    %cst_17 = arith.constant dense<0.000000e+00> : vector<8xf32>
    %49 = vector.multi_reduction <add>, %48, %cst_17 [1] : vector<8x8xf32> to vector<8xf32>
    %50 = vector.shape_cast %49 : vector<8xf32> to vector<8x1xf32>
    %51 = math.log %42 : vector<8x1xf32>
    %52 = arith.mulf %46, %51 : vector<8x1xf32>
    %53 = arith.subf %50, %52 : vector<8x1xf32>
    %54 = vector.broadcast %0 : i32 to vector<8x1xi32>
    %55 = arith.cmpi eq, %10, %54 : vector<8x1xi32>
    %56 = arith.extui %55 : vector<8x1xi1> to vector<8x1xi32>
    %57 = arith.sitofp %56 : vector<8x1xi32> to vector<8x1xf32>
    %cst_18 = arith.constant 1.000000e+00 : f32
    %58 = arith.subf %2, %cst_18 : f32
    %59 = vector.broadcast %58 : f32 to vector<8x1xf32>
    %60 = arith.mulf %57, %59 : vector<8x1xf32>
    %cst_19 = arith.constant 1.000000e+00 : f32
    %61 = vector.broadcast %cst_19 : f32 to vector<8x1xf32>
    %62 = arith.addf %61, %60 : vector<8x1xf32>
    %cst_20 = arith.constant 0.000000e+00 : f32
    %63 = vector.broadcast %cst_20 : f32 to vector<8x1xf32>
    %64 = arith.cmpf oeq, %46, %63 : vector<8x1xf32>
    %cst_21 = arith.constant 1.000000e+00 : f32
    %65 = vector.broadcast %cst_21 : f32 to vector<8x1xf32>
    %66 = arith.divf %65, %46 : vector<8x1xf32>
    %cst_22 = arith.constant 0.000000e+00 : f32
    %67 = vector.broadcast %cst_22 : f32 to vector<8x1xf32>
    %68 = arith.select %64, %67, %66 : vector<8x1xi1>, vector<8x1xf32>
    %cst_23 = arith.constant -1.000000e+00 : f32
    %69 = vector.broadcast %cst_23 : f32 to vector<8x1xf32>
    %70 = arith.mulf %69, %62 : vector<8x1xf32>
    %71 = arith.mulf %70, %53 : vector<8x1xf32>
    %72 = arith.mulf %71, %68 : vector<8x1xf32>
    %cst_24 = arith.constant 0.000000e+00 : f32
    %73 = vector.broadcast %cst_24 : f32 to vector<8x1xf32>
    %74 = arith.select %25, %72, %73 : vector<8x1xi1>, vector<8x1xf32>
    %c0_25 = arith.constant 0 : index
    %c0_26 = arith.constant 0 : index
    %75 = vector.load %arg7[%c0_25, %c0_26] : memref<8x1xf32, #tpu.memory_space<vmem>>, vector<8x1xf32>
    tpu.vector_store %arg7[%c0_25, %c0_26], %74 {strides = array<i32>} : memref<8x1xf32, #tpu.memory_space<vmem>>, vector<8x1xf32>,
    return
  }
  func.func @transform_0(%arg0: i32) -> i32 {
    %c0_i32 = arith.constant 0 : i32
    %c0_i32_0 = arith.constant 0 : i32
    return %c0_i32 : i32
  }
  func.func @transform_1(%arg0: i32) -> i32 {
    %c0_i32 = arith.constant 0 : i32
    %c0_i32_0 = arith.constant 0 : i32
    return %c0_i32 : i32
  }
  func.func @transform_2(%arg0: i32) -> (i32, i32) {
    %c0_i32 = arith.constant 0 : i32
    %c0_i32_0 = arith.constant 0 : i32
    return %arg0, %c0_i32 : i32, i32
  }
  func.func @transform_3(%arg0: i32) -> (i32, i32) {
    %c0_i32 = arith.constant 0 : i32
    %c0_i32_0 = arith.constant 0 : i32
    %c0_i32_1 = arith.constant 0 : i32
    return %c0_i32, %c0_i32_0 : i32, i32
  }
  func.func @transform_4(%arg0: i32) -> (i32, i32) {
    %c0_i32 = arith.constant 0 : i32
    %c0_i32_0 = arith.constant 0 : i32
    return %arg0, %c0_i32 : i32, i32
  }
  func.func @transform_5(%arg0: i32) -> (i32, i32) {
    %c0_i32 = arith.constant 0 : i32
    %c0_i32_0 = arith.constant 0 : i32
    %c0_i32_1 = arith.constant 0 : i32
    return %c0_i32, %c0_i32_0 : i32, i32
  }
  func.func @transform_6(%arg0: i32) -> (i32, i32) {
    %c0_i32 = arith.constant 0 : i32
    %c0_i32_0 = arith.constant 0 : i32
    return %arg0, %c0_i32 : i32, i32
  }
}

</mosaic_0001>

<bundles_post_ra>
// kernel: tpu_custom_call.1
= control target key start
LH: loop header
LB: loop body
LE: loop exit
PB: predicated region body
PF: predicated region fallthrough
CT: control target
= control target key end

     0   :  { %12 = vsyncpa [#allocation4], 0  ;;  %s281_s0 = inlined_call_operand.vmem [shape: s32[2], index: 0, kind: input, shape index: {}]   ;;  %s282_s1 = inlined_call_operand.<no memory space> [shape: f32[1], index: 1, kind: input, shape index: {}]   ;;  %s283_s2 = inlined_call_operand.vmem [shape: bf16[8,32], index: 2, kind: input, shape index: {}]   ;;  %s284_s3 = inlined_call_operand.vmem [shape: bf16[8,32], index: 3, kind: input, shape index: {}]   ;;  %s285_s4 = inlined_call_operand.vmem [shape: s32[8,1], index: 4, kind: input, shape index: {}]   ;;  %s286_s5 = inlined_call_operand.vmem [shape: s32[1,8], index: 5, kind: input, shape index: {}]   ;;  %s287_s6 = inlined_call_operand.vmem [shape: f32[8,1], index: 6, kind: output, shape index: {}]  }
   0x1   :  { %s19_s23 = sshll.u32 %s281_s0, 4  ;;  %s20_s23 = int_to_ptr.vmem [resolvable:$true] %s19_s23 }
   0x2   :  { %s190_s24 = scalar_lea.vmem %s20_s23, 16  ;;  %p195_p1 = scmp.lt.s32.totalorder %s20_s23, %s20_s23 }
   0x3   :  { %p191_p0 = scmp.ne.s32.totalorder %s20_s23, %s190_s24  ;;  %p196_p2 = scmp.lt.s32.totalorder %s190_s24, %s190_s24 }
   0x5   :  { %p197_p3 = por %p196_p2, %p195_p1 }
   0x7   :  { %p198_p4 = pnand %p197_p3, %p191_p0 }
   0x9   :  { %201 = shalt.err (!%p198_p4)
}
   0xa   :  { %s204_s25 = smov [#allocation3]  }
   0xb   :  { %22 = dma.vmem_to_smem %s20_s23, 16, %s204_s25, [#allocation4]  }
   0xc   :  { %202 = dma.done.wait [#allocation4], 16  }
   0xd   :  { %203 = vsyncadd [#allocation4], 4294967280 }
   0xe   :  { %36 = sfence }
   0xf   :  { %v45_v0 = vld [vmem:[%s284_s3] sm:$0xf]  ;;  %vm46_vm0 = vcmask 261120   ;;  %v205_v1 = vmov 0.0   ;;  %vm206_vm1 = vmmov 0   ;;  %v207_v7 = vmov 0  }
  0x10   :  { %173 = vmatprep.subr.bf16.mxu0 %v205_v1  ;;  %v51_v2 = vsel %vm46_vm0, %v45_v0, 0  ;;  %175 = vmatprep.mubr.msk.bf16.mxu0 %vm206_vm1, %v205_v1  ;;  %v41_v3 = vld [vmem:[%s283_s2] sm:$0xf]  ;;  %s252_s29 = sld [smem:[#allocation3 + $0x1]]  ;;  %v96_v8 = vlaneseq  ;;  %vm118_vm3 = vcmask 64512   ;;  %s170_s9 = sadd.f32 -1.0, %s282_s1 }
  0x11   :  { %174 = vmatpush3.bf16.xpose.msra.mxu0 %v51_v2  ;;  %v42_v4 = vunpack.c.l.bf16 %v41_v3  ;;  %183 = vset.pattern.permute.xlu0 %v207_v7  ;;  %v93_v18 = vld [vmem:[%s285_s4] sm:$0xff]  ;;  %s38_s4 = sld [smem:[#allocation3]]  ;;  %vm158_vm12 = vcmask 7168  }
  0x12   :  { %v101_v9 = vand.u32 127, %v96_v8  ;;  %v97_v22 = vshrl.u32 %v96_v8, 7  ;;  %v167_v23 = vld [vmem:[%s286_s5] ss:$0 sm:$0xff]  ;;  %v147_v34 = vstv %s170_s9 }
  0x13   :  { %v43_v5 = vmul.f32 14.285714, %v42_v4 }
  0x14   :  { %vm104_vm4 = vcmp.ne.s32.totalorder %v97_v22, %v101_v9 }
  0x15   :  { %v44_v6 = vpack.c.bf16 %v43_v5, %v43_v5 }
  0x16   :  { %v102_v10 = vstv %s252_s29 }
  0x17   :  { %vm255_vm2 = vcmp.lt.s32.totalorder %v101_v9, %v102_v10  ;;  %v142_v32 = vstv %s38_s4  ;;  %vm105_vm11 = vcmp.lt.s32.totalorder %v97_v22, %v102_v10 }
  0x18   :  { %176 = vmatmul.mubr.msk.bf16.vlgmr.msra.gmra.mrb[0].mxu0 %vm46_vm0, %v44_v6  ;;  %vm116_vm7 = vmand %vm104_vm4, %vm255_vm2  ;;  %vm143_vm9 = vcmp.eq.s32.totalorder %v93_v18, %v142_v32 }
  0x19   :  { %v169_v35 = vsel %vm143_vm9, 1.0, %v205_v1 }
  0x1a   :  { %v148_v37 = vmul.f32 %v169_v35, %v147_v34 }
  0x1c   :  { %v149_v38 = vadd.f32 1.0, %v148_v37 }
  0x1e   :  { %v154_v42 = vmul.f32 -1.0, %v149_v38 }
  0xeb   :  { %v87_v12 = vpop.f32.mrb[0].mxu0 }
  0xec   :  { %v177_v13 = vpop.f32.mrb[1].mxu0  ;;  %v117_v14 = vsel %vm255_vm2, %v87_v12, -1e+30 }
  0xed   :  { %v90_v15 = vpop.f32.mrb[2].mxu0  ;;  %v119_v16 = vsel %vm118_vm3, %v117_v14, -inf }
  0xee   :  { %v178_v17 = vpop.f32.mrb[3].mxu0  ;;  %120 = vmax.xlane.f32.xlu0 %v119_v16 }
 0x104   :  { %107 = vperm.xlu0 %183, %v93_v18  }
 0x17b   :  { %v121_v19 = vpop.xlane.xlu0 %120 }
 0x17c   :  { %v122_v20 = vsub.f32 %v87_v12, %v121_v19 }
 0x17e   :  { %v123_v21 = vmul.f32 1.442695, %v122_v20 }
 0x180   :  { %184 = vpow2.f32 %v123_v21 }
 0x183   :  { %v108_v24 = vpop.permute.xlu0 %107 }
 0x184   :  { %vm113_vm5 = vcmp.eq.s32.totalorder %v108_v24, %v167_v23 }
 0x185   :  { %vm114_vm6 = vmand %vm113_vm5, %vm104_vm4 }
 0x186   :  { %vm115_vm8 = vmand %vm114_vm6, %vm255_vm2 }
 0x187   :  { %v168_v27 = vsel %vm115_vm8, 1.0, %v205_v1  ;;  %v134_v30 = vsel %vm115_vm8, %v122_v20, 0.0 }
 0x188   :  { %v131_v29 = vsel %vm118_vm3, %v168_v27, 0.0  ;;  %v135_v31 = vsel %vm118_vm3, %v134_v30, 0.0 }
 0x18a   :  { %v185_v25 = vpop.eup %184 }
 0x18b   :  { %v125_v26 = vsel %vm116_vm7, %v185_v25, 0.0 }
 0x18c   :  { %v126_v28 = vsel %vm118_vm3, %v125_v26, 0.0 }
 0x18d   :  { %127 = vadd.xlane.f32.xlu1 %v126_v28 }
 0x191   :  { %132 = vadd.xlane.f32.xlu1 %v131_v29 }
 0x195   :  { %136 = vadd.xlane.f32.xlu1 %v135_v31 }
 0x21a   :  { %v128_v33 = vpop.xlane.xlu1 %127 }
 0x21b   :  { %186 = vlog2.f32 %v128_v33 }
 0x21e   :  { %v133_v36 = vpop.xlane.xlu1 %132 }
 0x21f   :  { %188 = vrcp.f32 %v133_v36  ;;  %vm150_vm10 = vcmp.eq.f32.partialorder %v133_v36, 0.0 }
 0x222   :  { %v137_v43 = vpop.xlane.xlu1 %136 }
 0x225   :  { %v187_v39 = vpop.eup %186 }
 0x226   :  { %v139_v40 = vmul.f32 0.6931472, %v187_v39 }
 0x228   :  { %v140_v41 = vmul.f32 %v139_v40, %v133_v36 }
 0x229   :  { %v189_v44 = vpop.eup %188 }
 0x22a   :  { %v141_v45 = vsub.f32 %v137_v43, %v140_v41  ;;  %v153_v47 = vsel %vm150_vm10, 0.0, %v189_v44 }
 0x22c   :  { %v155_v46 = vmul.f32 %v154_v42, %v141_v45 }
 0x22e   :  { %v156_v48 = vmul.f32 %v155_v46, %v153_v47 }
 0x230   :  { %v157_v49 = vsel %vm105_vm11, %v156_v48, 0.0 }
 0x231   :  { %159 = vst.msk [vmem:[%s287_s6] sm:$0xff] %vm158_vm12, %v157_v49 }
 0x232   :  { %164 = vsyncpa [#allocation4], 1 }

</bundles_post_ra>
